<compile_context>
chip_gen: v6e
topology: v6e:2x2x1
jax: 0.10.0
libtpu: 0.0.40
codegen_flags: <defaults>
</compile_context>

<pallas_src>
import functools

import jax
import jax.numpy as jnp
from jax import lax
from jax.experimental import pallas as pl
from jax.experimental.pallas import tpu as pltpu

# Conservative across v5e/v6e (128 MiB VMEM) and v7x (64 MiB VMEM).
_VMEM_LIMIT_BYTES = 40 * 1024 * 1024    # explicit scoped-VMEM limit for all calls
_FUSED_VMEM_BUDGET = 24 * 1024 * 1024   # f32 in+out (with 2x headroom) gridless cap
_TILE_BYTES_TARGET = 2 * 1024 * 1024    # ~2 MiB of W_T per grid step on tiled path


def _default_fused_max_n(m):
    # ~16*m bytes per column (f32 W_T in + dW_T out, 2x headroom for buffers).
    return max(1024, _FUSED_VMEM_BUDGET // (16 * m))


def _default_tile_n(m, n):
    # ~2 MiB of W_T per step, but keep >= 4 N-steps for pipelining; multiple of 128.
    target = max(512, _TILE_BYTES_TARGET // (4 * m))
    t = min(target, pl.cdiv(n, 4))
    t = max(128, (t // 128) * 128)
    return t


# ---------------------------------------------------------------- kernels ---

def _fused_rhs_kernel(scale_ref, wt_ref, phi_ref, theta_ref, out_ref):
    # Gridless: wt (m, N), phi (1, N), theta (m, 1), out (m, N).
    phi = phi_ref[...]
    s = jnp.sum(wt_ref[...] * phi, axis=-1, keepdims=True)      # (m, 1) lane reduce
    v = scale_ref[0, 0] * (s + theta_ref[...])                  # scale = -alpha
    out_ref[...] = v * phi                                       # dW.T


def _fused_euler_kernel(scale_ref, wt_ref, phi_ref, theta_ref, out_ref):
    # Gridless fused Euler step: out = W_T + dt*dW_T, scale = -alpha*dt.
    phi = phi_ref[...]
    s = jnp.sum(wt_ref[...] * phi, axis=-1, keepdims=True)
    v = scale_ref[0, 0] * (s + theta_ref[...])
    out_ref[...] = wt_ref[...] + v * phi


def _two_phase_kernel(scale_ref, wt_ref, phi_ref, theta_ref, out_ref, acc_ref,
                      *, n, tile_n, add_w):
    # Single-launch large-N path, grid = (2, kt):
    #   phase p=0: accumulate s = W.T @ phi over N-tiles into acc (m, 1) scratch,
    #              finalize acc <- scale * (s + theta) on the last tile.
    #   phase p=1: write out tile = acc * phi_tile  (+ W_T tile for Euler).
    p = pl.program_id(0)
    k = pl.program_id(1)
    kt = pl.num_programs(1)

    phi = phi_ref[...]                                           # (1, tile_n)
    lane = lax.broadcasted_iota(jnp.int32, phi.shape, 1)
    valid = (k * tile_n + lane) < n                              # mask ragged tail
    phi_m = jnp.where(valid, phi, 0.0)

    @pl.when(p == 0)
    def _reduce():
        @pl.when(k == 0)
        def _():
            acc_ref[...] = jnp.zeros_like(acc_ref)

        # Mask the product (not just phi): OOB W_T lanes are undefined and
        # could be NaN/Inf; where() keeps them out of the accumulator.
        prod = jnp.where(valid, wt_ref[...] * phi, 0.0)          # (m, tile_n)
        acc_ref[...] += jnp.sum(prod, axis=-1, keepdims=True)

        @pl.when(k == kt - 1)
        def _():
            acc_ref[...] = scale_ref[0, 0] * (acc_ref[...] + theta_ref[...])

    @pl.when(p == 1)
    def _write():
        d = acc_ref[...] * phi_m                                 # (m, tile_n)
        if add_w:                                                # Euler: W + dt*dW
            d = wt_ref[...] + d
        # OOB lanes of the last tile are dropped by the clamped writeback DMA.
        out_ref[...] = d


# --------------------------------------------------------- call helpers -----

def _gridless_call(kernel, scale_arr, W_T, phi_row, theta_col, *, alias, cost):
    m, N = W_T.shape
    smem = pl.BlockSpec(memory_space=pltpu.MemorySpace.SMEM)
    vmem = pl.BlockSpec(memory_space=pltpu.MemorySpace.VMEM)
    return pl.pallas_call(
        kernel,
        out_shape=jax.ShapeDtypeStruct((m, N), jnp.float32),
        in_specs=[smem, vmem, vmem, vmem],
        out_specs=vmem,
        input_output_aliases=({1: 0} if alias else {}),
        compiler_params=pltpu.CompilerParams(vmem_limit_bytes=_VMEM_LIMIT_BYTES),
        cost_estimate=cost,
    )(scale_arr, W_T, phi_row, theta_col)


def _two_phase_call(scale_arr, W_T, phi_row, theta_col, *, tile_n, add_w, cost):
    m, N = W_T.shape
    kt = pl.cdiv(N, tile_n)
    kernel = functools.partial(_two_phase_kernel, n=N, tile_n=tile_n, add_w=add_w)
    smem = pl.BlockSpec(memory_space=pltpu.MemorySpace.SMEM)
    if add_w:
        # Euler needs W_T tile k again in phase 1 (second read of W, 3 passes total).
        wt_map = lambda p, k: (0, k)
    else:
        # RHS: pin W_T to tile 0 in phase 1 -> no re-read (one extra tile only).
        wt_map = lambda p, k: (0, k * (1 - p))
    return pl.pallas_call(
        kernel,
        out_shape=jax.ShapeDtypeStruct((m, N), jnp.float32),
        grid=(2, kt),
        in_specs=[
            smem,
            pl.BlockSpec((m, tile_n), wt_map),
            pl.BlockSpec((1, tile_n), lambda p, k: (0, k)),
            pl.BlockSpec((m, 1), lambda p, k: (0, 0)),
        ],
        # Phase 0 keeps the output pinned to block 0 (never written, never
        # flushed until phase 1 overwrites it); phase 1 walks the N-tiles.
        out_specs=pl.BlockSpec((m, tile_n), lambda p, k: (0, k * p)),
        scratch_shapes=[pltpu.VMEM((m, 1), jnp.float32)],
        input_output_aliases=({1: 0} if add_w else {}),
        compiler_params=pltpu.CompilerParams(
            dimension_semantics=("arbitrary", "arbitrary"),
            vmem_limit_bytes=_VMEM_LIMIT_BYTES,
        ),
        cost_estimate=cost,
    )(scale_arr, W_T, phi_row, theta_col)


def _prep(W_T, phi_row, theta_col):
    m, N = W_T.shape
    W_T = jnp.asarray(W_T, jnp.float32)
    phi_row = jnp.asarray(phi_row, jnp.float32).reshape(1, N)
    theta_col = jnp.asarray(theta_col, jnp.float32).reshape(m, 1)
    return m, N, W_T, phi_row, theta_col


# --------------------------------------------------------------- wrappers ---

def actor_rhs_transposed(W_T, phi_row, theta_col, alpha, *,
                         fused_max_n=None, tile_n=None):
    """dW.T = -alpha * (W.T @ phi_u + theta) * phi_u  in lane-dense (m, N) layout.

    W_T: (m, N) f32, phi_row: (1, N), theta_col: (m, 1), alpha: runtime scalar.
    Integrators should keep W in this layout and call this directly (no transposes).
    """
    m, N, W_T, phi_row, theta_col = _prep(W_T, phi_row, theta_col)
    scale = (-jnp.asarray(alpha, jnp.float32)).reshape(1, 1)
    cost = pl.CostEstimate(flops=3 * m * N, transcendentals=0,
                           bytes_accessed=4 * (2 * m * N + 2 * N + m))
    cap = _default_fused_max_n(m) if fused_max_n is None else fused_max_n
    if N <= cap:
        return _gridless_call(_fused_rhs_kernel, scale, W_T, phi_row, theta_col,
                              alias=False, cost=cost)
    tn = _default_tile_n(m, N) if tile_n is None else tile_n
    return _two_phase_call(scale, W_T, phi_row, theta_col,
                           tile_n=tn, add_w=False, cost=cost)


def actor_euler_step_transposed(W_T, phi_row, theta_col, alpha, dt, *,
                                fused_max_n=None, tile_n=None):
    """One fused explicit-Euler step: W_T_new = W_T + dt * dW_T (aliased in place)."""
    m, N, W_T, phi_row, theta_col = _prep(W_T, phi_row, theta_col)
    scale = (-(jnp.asarray(alpha, jnp.float32) *
               jnp.asarray(dt, jnp.float32))).reshape(1, 1)
    cap = _default_fused_max_n(m) if fused_max_n is None else fused_max_n
    if N <= cap:
        cost = pl.CostEstimate(flops=4 * m * N, transcendentals=0,
                               bytes_accessed=4 * (2 * m * N + 2 * N + m))
        return _gridless_call(_fused_euler_kernel, scale, W_T, phi_row, theta_col,
                              alias=True, cost=cost)
    tn = _default_tile_n(m, N) if tile_n is None else tile_n
    cost = pl.CostEstimate(flops=4 * m * N, transcendentals=0,
                           bytes_accessed=4 * (3 * m * N + 2 * N + m))
    return _two_phase_call(scale, W_T, phi_row, theta_col,
                           tile_n=tn, add_w=True, cost=cost)


def actor_rhs(W, phi_u, theta, alpha):
    """PyTorch-convention compatibility shim: W (N, m), phi_u (N, 1), theta (m, 1).

    The two transposes here are layout plumbing only; hot loops should stay in
    the (m, N) layout and call actor_rhs_transposed / actor_euler_step_transposed.
    """
    N, m = W.shape
    dW_T = actor_rhs_transposed(W.T, jnp.reshape(phi_u, (1, N)), theta, alpha)
    return dW_T.T


# ------------------------------------------------------------------- demo ---

if __name__ == "__main__":
    key = jax.random.PRNGKey(0)

    def ref_rhs(W, phi_u, theta, alpha):
        return -alpha * (phi_u @ (W.T @ phi_u + theta).T)

    # Case 1: small Actor shapes -> fused gridless path (PyTorch-convention shim).
    N, m, alpha = 32, 16, 0.1
    k_w, k_phi, k_theta, key = jax.random.split(key, 4)
    W = jax.random.uniform(k_w, (N, m), dtype=jnp.float32) / 100.0   # torch.rand/100
    phi_u = jax.random.normal(k_phi, (N, 1), dtype=jnp.float32)
    theta = jax.random.normal(k_theta, (m, 1), dtype=jnp.float32)
    dW = jax.block_until_ready(actor_rhs(W, phi_u, theta, alpha))
    assert dW.shape == (N, m)
    assert jnp.allclose(dW, ref_rhs(W, phi_u, theta, alpha), atol=1e-5, rtol=1e-5)

    # Case 2: larger N. Default -> still the fused path (VMEM-derived cap);
    # overrides force the single-launch two-phase tiled path with a ragged
    # last tile to exercise the in-kernel lane mask.
    N2, m2, alpha2 = 1300, 16, 0.05
    k_w, k_phi, k_theta, key = jax.random.split(key, 4)
    W2 = jax.random.uniform(k_w, (N2, m2), dtype=jnp.float32) / 100.0
    phi2 = jax.random.normal(k_phi, (N2, 1), dtype=jnp.float32)
    theta2 = jax.random.normal(k_theta, (m2, 1), dtype=jnp.float32)
    ref2 = ref_rhs(W2, phi2, theta2, alpha2)

    dW2_fused = actor_rhs_transposed(W2.T, phi2.reshape(1, N2), theta2, alpha2)
    dW2_tiled = actor_rhs_transposed(W2.T, phi2.reshape(1, N2), theta2, alpha2,
                                     fused_max_n=0, tile_n=512)
    jax.block_until_ready((dW2_fused, dW2_tiled))
    assert jnp.allclose(dW2_fused.T, ref2, atol=1e-5, rtol=1e-4)
    assert jnp.allclose(dW2_tiled.T, ref2, atol=1e-5, rtol=1e-4)

    # Case 3: fused explicit-Euler step (input_output_aliases), both paths.
    dt = 1e-2
    ref_step = W2 + dt * ref2
    newW_T_fused = actor_euler_step_transposed(W2.T, phi2.reshape(1, N2),
                                               theta2, alpha2, dt)
    newW_T_tiled = actor_euler_step_transposed(W2.T, phi2.reshape(1, N2),
                                               theta2, alpha2, dt,
                                               fused_max_n=0, tile_n=512)
    jax.block_until_ready((newW_T_fused, newW_T_tiled))
    assert jnp.allclose(newW_T_fused.T, ref_step, atol=1e-5, rtol=1e-4)
    assert jnp.allclose(newW_T_tiled.T, ref_step, atol=1e-5, rtol=1e-4)

    print("KERNEL_OK")
</pallas_src>

<mosaic_0001>
module attributes {stable_mosaic.version = 11 : i64} {
  func.func @_fused_rhs_kernel(%arg0: memref<1x1xf32, #tpu.memory_space<smem>>, %arg1: memref<16x32xf32, #tpu.memory_space<vmem>>, %arg2: memref<1x32xf32, #tpu.memory_space<vmem>>, %arg3: memref<16x1xf32, #tpu.memory_space<vmem>>, %arg4: memref<16x32xf32, #tpu.memory_space<vmem>>) attributes {dimension_semantics = [], scalar_prefetch = 0 : i64, scratch_operands = 0 : i64, tpu.core_type = #tpu.core_type<tc>} {
    %c0 = arith.constant 0 : index
    %c0_0 = arith.constant 0 : index
    %0 = vector.load %arg2[%c0, %c0_0] : memref<1x32xf32, #tpu.memory_space<vmem>>, vector<1x32xf32>
    %c0_1 = arith.constant 0 : index
    %c0_2 = arith.constant 0 : index
    %1 = vector.load %arg1[%c0_1, %c0_2] : memref<16x32xf32, #tpu.memory_space<vmem>>, vector<16x32xf32>
    %2 = vector.broadcast %0 : vector<1x32xf32> to vector<16x32xf32>
    %3 = arith.mulf %1, %2 : vector<16x32xf32>
    %cst = arith.constant dense<0.000000e+00> : vector<16xf32>
    %4 = vector.multi_reduction <add>, %3, %cst [1] : vector<16x32xf32> to vector<16xf32>
    %5 = vector.shape_cast %4 : vector<16xf32> to vector<16x1xf32>
    %c0_3 = arith.constant 0 : index
    %c0_4 = arith.constant 0 : index
    %6 = memref.load %arg0[%c0_3, %c0_4] : memref<1x1xf32, #tpu.memory_space<smem>>
    %c0_5 = arith.constant 0 : index
    %c0_6 = arith.constant 0 : index
    %7 = vector.load %arg3[%c0_5, %c0_6] : memref<16x1xf32, #tpu.memory_space<vmem>>, vector<16x1xf32>
    %8 = arith.addf %5, %7 : vector<16x1xf32>
    %9 = vector.broadcast %6 : f32 to vector<16x1xf32>
    %10 = arith.mulf %9, %8 : vector<16x1xf32>
    %11 = vector.broadcast %10 : vector<16x1xf32> to vector<16x32xf32>
    %12 = vector.broadcast %0 : vector<1x32xf32> to vector<16x32xf32>
    %13 = arith.mulf %11, %12 : vector<16x32xf32>
    %c0_7 = arith.constant 0 : index
    %c0_8 = arith.constant 0 : index
    %14 = vector.load %arg4[%c0_7, %c0_8] : memref<16x32xf32, #tpu.memory_space<vmem>>, vector<16x32xf32>
    tpu.vector_store %arg4[%c0_7, %c0_8], %13 {strides = array<i32>} : memref<16x32xf32, #tpu.memory_space<vmem>>, vector<16x32xf32>,
    return
  }
}

</mosaic_0001>

<bundles_post_ra>
// kernel: tpu_custom_call.1
= control target key start
LH: loop header
LB: loop body
LE: loop exit
PB: predicated region body
PF: predicated region fallthrough
CT: control target
= control target key end

     0   :  { %vm30_vm0 = vcmask 261120   ;;  %s158_s0 = inlined_call_operand.<no memory space> [shape: f32[1,1], index: 0, kind: input, shape index: {}]   ;;  %s159_s1 = inlined_call_operand.vmem [shape: f32[16,32], index: 1, kind: input, shape index: {}]   ;;  %s160_s2 = inlined_call_operand.vmem [shape: f32[1,32], index: 2, kind: input, shape index: {}]   ;;  %s161_s3 = inlined_call_operand.vmem [shape: f32[16,1], index: 3, kind: input, shape index: {}]   ;;  %s162_s4 = inlined_call_operand.hbm [shape: f32[16,32], index: 4, kind: output, shape index: {}]  }
   0x1   :  { %v75_v0 = vld [vmem:[%s160_s2] ss:$0 sm:$0xff]  ;;  %v21_v2 = vld [vmem:[%s159_s1 + $0x8] sm:$0xff] }
   0x2   :  { %v20_v1 = vld [vmem:[%s159_s1] sm:$0xff]  ;;  %v29_v4 = vmul.f32 %v75_v0, %v21_v2 }
   0x3   :  { %v28_v3 = vmul.f32 %v75_v0, %v20_v1 }
   0x4   :  { %10 = vsyncpa [#allocation4], 0  ;;  %v34_v6 = vsel %vm30_vm0, %v29_v4, 0.0  ;;  %v104_v7 = vmov 0   ;;  %v38_v8 = vld [vmem:[%s161_s3] sm:$0xff]  ;;  %v42_v10 = vstv %s158_s0  ;;  %v39_v12 = vld [vmem:[%s161_s3 + $0x8] sm:$0xff] }
   0x5   :  { %v31_v5 = vsel %vm30_vm0, %v28_v3, 0.0  ;;  %80 = vset.pattern.permute.xlu1 %v104_v7  ;;  %81 = vset.pattern.permute.xlu0 %v104_v7  ;;  %s105_s25 = smov [#allocation3]  }
   0x6   :  { %32 = vadd.xlane.f32.xlu0 %v31_v5  ;;  %s64_s26 = sshll.u32 %s105_s25, 4  ;;  %s65_s26 = int_to_ptr.vmem [resolvable:$true] %s64_s26 }
   0x7   :  { %s82_s0 = scalar_lea.vmem %s65_s26, 256  ;;  %p87_p1 = scmp.lt.s32.totalorder %s65_s26, %s65_s26 }
   0x8   :  { %p83_p0 = scmp.ne.s32.totalorder %s65_s26, %s82_s0  ;;  %p88_p2 = scmp.lt.s32.totalorder %s82_s0, %s82_s0 }
   0xa   :  { %35 = vadd.xlane.f32.xlu0 %v34_v6  ;;  %p89_p3 = por %p88_p2, %p87_p1 }
   0xc   :  { %p90_p4 = pnand %p89_p3, %p83_p0 }
  0x8f   :  { %v33_v9 = vpop.xlane.xlu0 %32 }
  0x90   :  { %v40_v11 = vadd.f32 %v38_v8, %v33_v9 }
  0x92   :  { %v43_v13 = vmul.f32 %v42_v10, %v40_v11 }
  0x93   :  { %v36_v14 = vpop.xlane.xlu0 %35 }
  0x94   :  { %v41_v15 = vadd.f32 %v39_v12, %v36_v14  ;;  %47 = vperm.xlu1 %80, %v43_v13  }
  0x96   :  { %v44_v16 = vmul.f32 %v42_v10, %v41_v15 }
  0x98   :  { %52 = vperm.xlu1 %80, %v44_v16  }
 0x10f   :  { %v48_v17 = vpop.permute.xlu1 %47 }
 0x110   :  { %v55_v18 = vmul.f32 %v75_v0, %v48_v17 }
 0x112   :  { %57 = vst.msk [vmem:[#allocation3] sm:$0xff] %vm30_vm0, %v55_v18 }
 0x113   :  { %v53_v19 = vpop.permute.xlu1 %52 }
 0x114   :  { %v56_v20 = vmul.f32 %v75_v0, %v53_v19 }
 0x116   :  { %58 = vst.msk [vmem:[#allocation3 + $0x8] sm:$0xff] %vm30_vm0, %v56_v20 }
 0x117   :  { %93 = shalt.err (!%p90_p4)
}
 0x118   :  { %s106_s3 = smov 128   ;;  %s107_s27 = smov 8  }
 0x119   :  { %70 = dma.vmem_to_hbm [thread:$0]  %s65_s26, 256, %s162_s4, [#allocation4], %s106_s3, %s106_s3, %s107_s27  }
 0x11a   :  { %102 = dma.done.wait [#allocation4], 256  }
 0x11b   :  { %103 = vsyncadd [#allocation4], 4294967040 }
 0x11c   :  { %74 = vsyncpa [#allocation4], 1 }

</bundles_post_ra>
